<compile_context>
chip_gen: v7x
topology: tpu7x:2x2x1
jax: 0.10.0
libtpu: 0.0.40
codegen_flags: <defaults>
</compile_context>

<pallas_src>
import functools
import math

import jax
import jax.numpy as jnp
from jax import lax
from jax.experimental import pallas as pl
from jax.experimental.pallas import tpu as pltpu


def _memory_kernel(km_ref, kq_ref, vm_ref, vq_ref, out_ref,
                   m_sc, l_sc, acc_sc, *, scale, cv):
    """One (batch, hw-tile, thw-tile) grid step.

    km_ref : [Ck, Tt]    keys_m tile (contraction over Ck = dim 0)
    kq_ref : [Ck, HWt]   query keys tile
    vm_ref : [Cv, Tt]    memory values tile
    vq_ref : [Cv, HWt]   query values tile (copied through on the last step)
    out_ref: [2*Cv, HWt] fused output (mem ; value_q)
    m_sc, l_sc: [1, HWt] f32 running max / running sum-exp
    acc_sc : [Cv, HWt]   f32 running value accumulator
    """
    t = pl.program_id(2)

    @pl.when(t == 0)
    def _init():
        m_sc[...] = jnp.full_like(m_sc, -jnp.inf)
        l_sc[...] = jnp.zeros_like(l_sc)
        acc_sc[...] = jnp.zeros_like(acc_sc)

    # Logits for this THW tile on the MXU: s[t, h] = sum_c km[c, t] * kq[c, h].
    km = km_ref[...].astype(jnp.bfloat16)
    kq = kq_ref[...].astype(jnp.bfloat16)
    s = lax.dot_general(km, kq, (((0,), (0,)), ((), ())),
                        preferred_element_type=jnp.float32) * scale     # [Tt, HWt]

    # Online softmax over the THW (memory) axis == F.softmax(p, dim=1).
    m_prev = m_sc[...]
    m_new = jnp.maximum(m_prev, jnp.max(s, axis=0, keepdims=True))      # [1, HWt]
    alpha = jnp.exp(m_prev - m_new)                                     # [1, HWt]
    p = jnp.exp(s - m_new)                                              # [Tt, HWt]
    l_sc[...] = alpha * l_sc[...] + jnp.sum(p, axis=0, keepdims=True)
    acc_sc[...] = alpha * acc_sc[...] + jnp.dot(
        vm_ref[...].astype(jnp.bfloat16), p.astype(jnp.bfloat16),
        preferred_element_type=jnp.float32)                             # [Cv, HWt]
    m_sc[...] = m_new

    @pl.when(t == pl.num_programs(2) - 1)
    def _finalize():
        inv_l = pl.reciprocal(l_sc[...], approx=True)                   # EUP slot
        out_ref[0:cv, :] = (acc_sc[...] * inv_l).astype(out_ref.dtype)
        out_ref[cv:2 * cv, :] = vq_ref[...].astype(out_ref.dtype)


def _pick_tile(total, candidates):
    for c in candidates:
        if total % c == 0:
            return c
    return total   # fall back to the full (untiled) extent


def memory_forward(keys_m, values_m, key_q, value_q, *,
                   thw_tile=None, hw_tile=None):
    """Pallas implementation of Memory.forward.

    keys_m:   [B, Ck, T, H, W]
    values_m: [B, Cv, T, H, W]
    key_q:    [B, Ck, H, W]
    value_q:  [B, Cv, H, W]
    returns:  [B, 2*Cv, H, W]
    """
    B, Ck, T, H, W = keys_m.shape
    _, Cv, _, _, _ = values_m.shape
    THW, HW = T * H * W, H * W
    scale = 1.0 / math.sqrt(Ck)

    # Reshapes only (no transpose, no extra HBM pass).
    km = keys_m.reshape(B, Ck, THW)
    kq = key_q.reshape(B, Ck, HW)
    vm = values_m.reshape(B, Cv, THW)
    vq = value_q.reshape(B, Cv, HW)

    # THW / HW tiles must be multiples of 128 (lane dim) unless they equal the
    # full extent.  THW tile is capped at 512 for VMEM headroom on v7x.
    tt = thw_tile if thw_tile is not None else _pick_tile(THW, (512, 256, 128))
    th = hw_tile if hw_tile is not None else _pick_tile(HW, (256, 128))
    assert THW % tt == 0 and HW % th == 0

    kernel = functools.partial(_memory_kernel, scale=scale, cv=Cv)

    out = pl.pallas_call(
        kernel,
        out_shape=jax.ShapeDtypeStruct((B, 2 * Cv, HW), values_m.dtype),
        grid_spec=pltpu.PrefetchScalarGridSpec(
            num_scalar_prefetch=0,
            grid=(B, HW // th, THW // tt),
            in_specs=[
                pl.BlockSpec((None, Ck, tt), lambda b, h, t: (b, 0, t)),   # km
                pl.BlockSpec((None, Ck, th), lambda b, h, t: (b, 0, h)),   # kq
                pl.BlockSpec((None, Cv, tt), lambda b, h, t: (b, 0, t)),   # vm
                pl.BlockSpec((None, Cv, th), lambda b, h, t: (b, 0, h)),   # vq
            ],
            out_specs=pl.BlockSpec((None, 2 * Cv, th), lambda b, h, t: (b, 0, h)),
            scratch_shapes=[
                pltpu.VMEM((1, th), jnp.float32),    # running max
                pltpu.VMEM((1, th), jnp.float32),    # running sum-exp
                pltpu.VMEM((Cv, th), jnp.float32),   # value accumulator
            ]),
        compiler_params=pltpu.CompilerParams(
            dimension_semantics=("parallel", "parallel", "arbitrary")),
    )(km, kq, vm, vq)

    return out.reshape(B, 2 * Cv, H, W)


def memory_forward_ref(keys_m, values_m, key_q, value_q):
    """Pure-JAX (f32) reference of the PyTorch forward pass."""
    B, Ck, T, H, W = keys_m.shape
    _, Cv, _, _, _ = values_m.shape
    km = jnp.transpose(keys_m.reshape(B, Ck, T * H * W), (0, 2, 1))
    kq = key_q.reshape(B, Ck, H * W)
    p = jnp.einsum('btc,bch->bth', km, kq) / math.sqrt(Ck)
    p = jax.nn.softmax(p, axis=1)
    vm = values_m.reshape(B, Cv, T * H * W)
    mem = jnp.einsum('bct,bth->bch', vm, p).reshape(B, Cv, H, W)
    return jnp.concatenate([mem, value_q], axis=1)


if __name__ == "__main__":
    # Small shapes consistent with the module (C_key=128, C_value=512 in the
    # real model; scaled down here).  T=4 so THW=256 and a thw_tile of 128
    # exercises the multi-step online-softmax reduction path.
    B, Ck, Cv, T, H, W = 2, 32, 64, 4, 8, 8

    key = jax.random.PRNGKey(0)
    k1, k2, k3, k4 = jax.random.split(key, 4)
    keys_m = jax.random.normal(k1, (B, Ck, T, H, W), dtype=jnp.float32)
    values_m = jax.random.normal(k2, (B, Cv, T, H, W), dtype=jnp.float32)
    key_q = jax.random.normal(k3, (B, Ck, H, W), dtype=jnp.float32)
    value_q = jax.random.normal(k4, (B, Cv, H, W), dtype=jnp.float32)

    out = memory_forward(keys_m, values_m, key_q, value_q, thw_tile=128)
    out = jax.block_until_ready(out)

    ref = memory_forward_ref(keys_m, values_m, key_q, value_q)
    assert out.shape == (B, 2 * Cv, H, W), out.shape
    # value_q half is copied through in f32 -> exact.
    assert jnp.array_equal(out[:, Cv:], value_q), "value_q passthrough mismatch"
    # mem half uses bf16 MXU operands with f32 accumulation -> bf16 tolerance.
    err = float(jnp.max(jnp.abs(out - ref)))
    assert jnp.allclose(out, ref, atol=3e-2, rtol=3e-2), err

    print("KERNEL_OK")
</pallas_src>

<mosaic_0001>
module attributes {stable_mosaic.version = 11 : i64} {
  func.func @_memory_kernel(%arg0: i32, %arg1: i32, %arg2: i32, %arg3: memref<1x32x128xf32, #tpu.memory_space<vmem>>, %arg4: memref<1x32x64xf32, #tpu.memory_space<vmem>>, %arg5: memref<1x64x128xf32, #tpu.memory_space<vmem>>, %arg6: memref<1x64x64xf32, #tpu.memory_space<vmem>>, %arg7: memref<1x128x64xf32, #tpu.memory_space<vmem>>, %arg8: memref<1x64xf32, #tpu.memory_space<vmem>>, %arg9: memref<1x64xf32, #tpu.memory_space<vmem>>, %arg10: memref<64x64xf32, #tpu.memory_space<vmem>>) attributes {dimension_semantics = [#tpu.dimension_semantics<parallel>, #tpu.dimension_semantics<parallel>, #tpu.dimension_semantics<arbitrary>], iteration_bounds = array<i64: 2, 1, 2>, scalar_prefetch = 0 : i64, scratch_operands = 3 : i64, tpu.core_type = #tpu.core_type<tc>, window_params = [{transform_indices = @transform_0, window_bounds = array<i64: 1, 32, 128>}, {transform_indices = @transform_1, window_bounds = array<i64: 1, 32, 64>}, {transform_indices = @transform_2, window_bounds = array<i64: 1, 64, 128>}, {transform_indices = @transform_3, window_bounds = array<i64: 1, 64, 64>}, {transform_indices = @transform_4, window_bounds = array<i64: 1, 128, 64>}]} {
    %c0_i32 = arith.constant 0 : i32
    %0 = arith.cmpi eq, %arg2, %c0_i32 : i32
    %1 = arith.extui %0 : i1 to i32
    %c0_i32_0 = arith.constant 0 : i32
    %2 = arith.cmpi ne, %1, %c0_i32_0 : i32
    scf.if %2 {
      %cst_26 = arith.constant 0xFF800000 : f32
      %41 = vector.broadcast %cst_26 : f32 to vector<1x64xf32>
      %c0_27 = arith.constant 0 : index
      %c0_28 = arith.constant 0 : index
      %42 = vector.load %arg8[%c0_27, %c0_28] : memref<1x64xf32, #tpu.memory_space<vmem>>, vector<1x64xf32>
      tpu.vector_store %arg8[%c0_27, %c0_28], %41 {strides = array<i32>} : memref<1x64xf32, #tpu.memory_space<vmem>>, vector<1x64xf32>,
      %cst_29 = arith.constant 0.000000e+00 : f32
      %43 = vector.broadcast %cst_29 : f32 to vector<1x64xf32>
      %c0_30 = arith.constant 0 : index
      %c0_31 = arith.constant 0 : index
      %44 = vector.load %arg9[%c0_30, %c0_31] : memref<1x64xf32, #tpu.memory_space<vmem>>, vector<1x64xf32>
      tpu.vector_store %arg9[%c0_30, %c0_31], %43 {strides = array<i32>} : memref<1x64xf32, #tpu.memory_space<vmem>>, vector<1x64xf32>,
      %cst_32 = arith.constant 0.000000e+00 : f32
      %45 = vector.broadcast %cst_32 : f32 to vector<64x64xf32>
      %c0_33 = arith.constant 0 : index
      %c0_34 = arith.constant 0 : index
      %46 = vector.load %arg10[%c0_33, %c0_34] : memref<64x64xf32, #tpu.memory_space<vmem>>, vector<64x64xf32>
      tpu.vector_store %arg10[%c0_33, %c0_34], %45 {strides = array<i32>} : memref<64x64xf32, #tpu.memory_space<vmem>>, vector<64x64xf32>,
    } else {
    }
    %c0 = arith.constant 0 : index
    %c0_1 = arith.constant 0 : index
    %c0_2 = arith.constant 0 : index
    %3 = vector.load %arg3[%c0, %c0_1, %c0_2] : memref<1x32x128xf32, #tpu.memory_space<vmem>>, vector<1x32x128xf32>
    %4 = vector.shape_cast %3 : vector<1x32x128xf32> to vector<32x128xf32>
    %5 = arith.truncf %4 : vector<32x128xf32> to vector<32x128xbf16>
    %c0_3 = arith.constant 0 : index
    %c0_4 = arith.constant 0 : index
    %c0_5 = arith.constant 0 : index
    %6 = vector.load %arg4[%c0_3, %c0_4, %c0_5] : memref<1x32x64xf32, #tpu.memory_space<vmem>>, vector<1x32x64xf32>
    %7 = vector.shape_cast %6 : vector<1x32x64xf32> to vector<32x64xf32>
    %8 = arith.truncf %7 : vector<32x64xf32> to vector<32x64xbf16>
    %cst = arith.constant dense<0.000000e+00> : vector<128x64xf32>
    %9 = tpu.matmul %5, %8, %cst {dimension_numbers = #tpu.dot_dimension_numbers<[0], [0], [1], [1], [0, 1, 1, 1], [], []>} : vector<32x128xbf16>, vector<32x64xbf16>, vector<128x64xf32> -> vector<128x64xf32>
    %cst_6 = arith.constant 0.176776692 : f32
    %10 = vector.broadcast %cst_6 : f32 to vector<128x64xf32>
    %11 = arith.mulf %9, %10 : vector<128x64xf32>
    %c0_7 = arith.constant 0 : index
    %c0_8 = arith.constant 0 : index
    %12 = vector.load %arg8[%c0_7, %c0_8] : memref<1x64xf32, #tpu.memory_space<vmem>>, vector<1x64xf32>
    %cst_9 = arith.constant dense<0xFF800000> : vector<64xf32>
    %13 = vector.multi_reduction <maximumf>, %11, %cst_9 [0] : vector<128x64xf32> to vector<64xf32>
    %14 = vector.shape_cast %13 : vector<64xf32> to vector<1x64xf32>
    %15 = arith.maximumf %12, %14 : vector<1x64xf32>
    %16 = arith.subf %12, %15 : vector<1x64xf32>
    %17 = math.exp %16 : vector<1x64xf32>
    %18 = vector.broadcast %15 : vector<1x64xf32> to vector<128x64xf32>
    %19 = arith.subf %11, %18 : vector<128x64xf32>
    %20 = math.exp %19 : vector<128x64xf32>
    %c0_10 = arith.constant 0 : index
    %c0_11 = arith.constant 0 : index
    %21 = vector.load %arg9[%c0_10, %c0_11] : memref<1x64xf32, #tpu.memory_space<vmem>>, vector<1x64xf32>
    %22 = arith.mulf %17, %21 : vector<1x64xf32>
    %cst_12 = arith.constant dense<0.000000e+00> : vector<64xf32>
    %23 = vector.multi_reduction <add>, %20, %cst_12 [0] : vector<128x64xf32> to vector<64xf32>
    %24 = vector.shape_cast %23 : vector<64xf32> to vector<1x64xf32>
    %25 = arith.addf %22, %24 : vector<1x64xf32>
    %c0_13 = arith.constant 0 : index
    %c0_14 = arith.constant 0 : index
    %26 = vector.load %arg9[%c0_13, %c0_14] : memref<1x64xf32, #tpu.memory_space<vmem>>, vector<1x64xf32>
    tpu.vector_store %arg9[%c0_13, %c0_14], %25 {strides = array<i32>} : memref<1x64xf32, #tpu.memory_space<vmem>>, vector<1x64xf32>,
    %c0_15 = arith.constant 0 : index
    %c0_16 = arith.constant 0 : index
    %27 = vector.load %arg10[%c0_15, %c0_16] : memref<64x64xf32, #tpu.memory_space<vmem>>, vector<64x64xf32>
    %28 = vector.broadcast %17 : vector<1x64xf32> to vector<64x64xf32>
    %29 = arith.mulf %28, %27 : vector<64x64xf32>
    %c0_17 = arith.constant 0 : index
    %c0_18 = arith.constant 0 : index
    %c0_19 = arith.constant 0 : index
    %30 = vector.load %arg5[%c0_17, %c0_18, %c0_19] : memref<1x64x128xf32, #tpu.memory_space<vmem>>, vector<1x64x128xf32>
    %31 = vector.shape_cast %30 : vector<1x64x128xf32> to vector<64x128xf32>
    %32 = arith.truncf %31 : vector<64x128xf32> to vector<64x128xbf16>
    %33 = arith.truncf %20 : vector<128x64xf32> to vector<128x64xbf16>
    %cst_20 = arith.constant dense<0.000000e+00> : vector<64x64xf32>
    %34 = tpu.matmul %32, %33, %cst_20 {dimension_numbers = #tpu.dot_dimension_numbers<[1], [0], [0], [1], [0, 0, 1, 1], [], []>} : vector<64x128xbf16>, vector<128x64xbf16>, vector<64x64xf32> -> vector<64x64xf32>
    %35 = arith.addf %29, %34 : vector<64x64xf32>
    %c0_21 = arith.constant 0 : index
    %c0_22 = arith.constant 0 : index
    %36 = vector.load %arg10[%c0_21, %c0_22] : memref<64x64xf32, #tpu.memory_space<vmem>>, vector<64x64xf32>
    tpu.vector_store %arg10[%c0_21, %c0_22], %35 {strides = array<i32>} : memref<64x64xf32, #tpu.memory_space<vmem>>, vector<64x64xf32>,
    %c0_23 = arith.constant 0 : index
    %c0_24 = arith.constant 0 : index
    %37 = vector.load %arg8[%c0_23, %c0_24] : memref<1x64xf32, #tpu.memory_space<vmem>>, vector<1x64xf32>
    tpu.vector_store %arg8[%c0_23, %c0_24], %15 {strides = array<i32>} : memref<1x64xf32, #tpu.memory_space<vmem>>, vector<1x64xf32>,
    %c1_i32 = arith.constant 1 : i32
    %38 = arith.cmpi eq, %arg2, %c1_i32 : i32
    %39 = arith.extui %38 : i1 to i32
    %c0_i32_25 = arith.constant 0 : i32
    %40 = arith.cmpi ne, %39, %c0_i32_25 : i32
    scf.if %40 {
      %c0_26 = arith.constant 0 : index
      %c0_27 = arith.constant 0 : index
      %41 = vector.load %arg9[%c0_26, %c0_27] : memref<1x64xf32, #tpu.memory_space<vmem>>, vector<1x64xf32>
      %42 = tpu.reciprocal %41 {approx = true} : vector<1x64xf32> -> vector<1x64xf32>
      %c0_28 = arith.constant 0 : index
      %c0_29 = arith.constant 0 : index
      %43 = vector.load %arg10[%c0_28, %c0_29] : memref<64x64xf32, #tpu.memory_space<vmem>>, vector<64x64xf32>
      %44 = vector.broadcast %42 : vector<1x64xf32> to vector<64x64xf32>
      %45 = arith.mulf %43, %44 : vector<64x64xf32>
      %c0_30 = arith.constant 0 : index
      %c0_31 = arith.constant 0 : index
      %c0_32 = arith.constant 0 : index
      %46 = vector.load %arg7[%c0_30, %c0_31, %c0_32] : memref<1x128x64xf32, #tpu.memory_space<vmem>>, vector<1x64x64xf32>
      %47 = vector.shape_cast %46 : vector<1x64x64xf32> to vector<64x64xf32>
      %48 = vector.shape_cast %45 : vector<64x64xf32> to vector<1x64x64xf32>
      tpu.vector_store %arg7[%c0_30, %c0_31, %c0_32], %48 {strides = array<i32>} : memref<1x128x64xf32, #tpu.memory_space<vmem>>, vector<1x64x64xf32>,
      %c0_33 = arith.constant 0 : index
      %c0_34 = arith.constant 0 : index
      %c0_35 = arith.constant 0 : index
      %49 = vector.load %arg6[%c0_33, %c0_34, %c0_35] : memref<1x64x64xf32, #tpu.memory_space<vmem>>, vector<1x64x64xf32>
      %50 = vector.shape_cast %49 : vector<1x64x64xf32> to vector<64x64xf32>
      %c0_36 = arith.constant 0 : index
      %c64 = arith.constant 64 : index
      %c0_37 = arith.constant 0 : index
      %51 = vector.load %arg7[%c0_36, %c64, %c0_37] : memref<1x128x64xf32, #tpu.memory_space<vmem>>, vector<1x64x64xf32>
      %52 = vector.shape_cast %51 : vector<1x64x64xf32> to vector<64x64xf32>
      %53 = vector.shape_cast %50 : vector<64x64xf32> to vector<1x64x64xf32>
      tpu.vector_store %arg7[%c0_36, %c64, %c0_37], %53 {strides = array<i32>} : memref<1x128x64xf32, #tpu.memory_space<vmem>>, vector<1x64x64xf32>,
    } else {
    }
    return
  }
  func.func @transform_0(%arg0: i32, %arg1: i32, %arg2: i32) -> (i32, i32, i32) {
    %c0_i32 = arith.constant 0 : i32
    %c0_i32_0 = arith.constant 0 : i32
    return %arg0, %c0_i32, %arg2 : i32, i32, i32
  }
  func.func @transform_1(%arg0: i32, %arg1: i32, %arg2: i32) -> (i32, i32, i32) {
    %c0_i32 = arith.constant 0 : i32
    %c0_i32_0 = arith.constant 0 : i32
    return %arg0, %c0_i32, %arg1 : i32, i32, i32
  }
  func.func @transform_2(%arg0: i32, %arg1: i32, %arg2: i32) -> (i32, i32, i32) {
    %c0_i32 = arith.constant 0 : i32
    %c0_i32_0 = arith.constant 0 : i32
    return %arg0, %c0_i32, %arg2 : i32, i32, i32
  }
  func.func @transform_3(%arg0: i32, %arg1: i32, %arg2: i32) -> (i32, i32, i32) {
    %c0_i32 = arith.constant 0 : i32
    %c0_i32_0 = arith.constant 0 : i32
    return %arg0, %c0_i32, %arg1 : i32, i32, i32
  }
  func.func @transform_4(%arg0: i32, %arg1: i32, %arg2: i32) -> (i32, i32, i32) {
    %c0_i32 = arith.constant 0 : i32
    %c0_i32_0 = arith.constant 0 : i32
    return %arg0, %c0_i32, %arg1 : i32, i32, i32
  }
}

</mosaic_0001>

<bundles_post_ra>
// kernel: tpu_custom_call.1
= control target key start
LH: loop header
LB: loop body
LE: loop exit
PB: predicated region body
PF: predicated region fallthrough
CT: control target
= control target key end

     0   :  { %s2117_s0 = inlined_call_operand.hbm [shape: f32[2,32,256], index: 0, kind: input, shape index: {}]   ;;  %s2118_s1 = inlined_call_operand.hbm [shape: f32[2,32,64], index: 1, kind: input, shape index: {}]   ;;  %s2119_s2 = inlined_call_operand.hbm [shape: f32[2,64,256], index: 2, kind: input, shape index: {}]   ;;  %s2120_s3 = inlined_call_operand.hbm [shape: f32[2,64,64], index: 3, kind: input, shape index: {}]   ;;  %s2121_s4 = inlined_call_operand.vmem [shape: f32[2,128,64], index: 4, kind: output, shape index: {}]  }
   0x1   :  { %2141 = sst [smem:[#allocation24_spill]] %s2117_s0 }
   0x2   :  { %2142 = sst [smem:[#allocation25_spill]] %s2118_s1 }
   0x3   :  { %2143 = sst [smem:[#allocation26_spill]] %s2121_s4 }
   0x4   :  { %9 = vsyncpa [#allocation6], 0 }
   0x5   :  { %11 = vsyncpa [#allocation6 + $0x1], 0 }
   0x6   :  { %12 = vsyncpa [#allocation8], 0 }
   0x7   :  { %14 = vsyncpa [#allocation8 + $0x1], 0 }
   0x8   :  { %15 = vsyncpa [#allocation11], 0 }
   0x9   :  { %17 = vsyncpa [#allocation11 + $0x1], 0  ;;  %s1555_s15 = smov 0   ;;  %s1557_s16 = smov 0  }
   0xa   :  { %s1559_s17 = smov 0   ;;  %s1561_s18 = smov 0  }
   0xb   :  { %s1563_s19 = smov 0   ;;  %s1565_s20 = smov 0  }
   0xc   :  { %s1567_s21 = smov 0   ;;  %s1569_s22 = smov 0  }
   0xd   :  { %s1571_s23 = smov 0   ;;  %s1573_s24 = smov 0  }
   0xe   :  { %s1575_s25 = smov 0  }
   0xf LB: > { %2144 = sst [smem:[#allocation16_spill]] %s1483_s16  ;;  %s2125_s26 = sadd.s32 4294967295, %s1519_s25   ;;  %s1519_s25 = sphi %s1575_s25, %s23_s25   ;;  %s1515_s24 = sphi %s1573_s24, %s2193_s24   ;;  %s1511_s23 = sphi %s1571_s23, %s2192_s23   ;;  %s1507_s22 = sphi %s1569_s22, %s2191_s22   ;;  %s1503_s21 = sphi %s1567_s21, %s2190_s21   ;;  %s1499_s20 = sphi %s1565_s20, %s2189_s20   ;;  %s1495_s19 = sphi %s1563_s19, %s2188_s19   ;;  %s1491_s18 = sphi %s1561_s18, %s2183_s18   ;;  %s1487_s17 = sphi %s1559_s17, %s2187_s17   ;;  %s1483_s16 = sphi %s1557_s16, %s2186_s16   ;;  %s1479_s15 = sphi %s1555_s15, %s2182_s15  }
  0x10   : > { %2145 = sst [smem:[#allocation17_spill]] %s1495_s19  ;;  %p2123_p0 = scmp.eq.s32.totalorder %s1519_s25, 0 }
  0x11   : > { %2146 = sst [smem:[#allocation18_spill]] %s1503_s21  ;;  %p1612_p1 = scmp.eq.s32.totalorder %s2125_s26, 0 }
  0x12   : > { %2147 = sst [smem:[#allocation19_spill]] %s1507_s22  ;;  %p86_p2 = scmp.ne.s32.totalorder %s1487_s17, %s1483_s16 }
  0x13   : > { %p92_p3 = scmp.ne.s32.totalorder %s1483_s16, %s1479_s15  ;;  %p2122_p4 = scmp.lt.s32.totalorder %s1519_s25, 4 }
  0x14   : > { %p88_p5 = por %p86_p2, %p2123_p0  ;;  %s222_s30 = sand.u32 1, %s1519_s25  }
  0x15   : > { %p1625_p6 = por %p92_p3, %p1612_p1  ;;  %s1631_s5 = sand.u32 1, %s1487_s17  }
  0x16   : > { %s1048_s6 = sshll.u32 %s1631_s5, 5  ;;  %s1076_s7 = sshll.u32 %s1515_s24, 9 }
  0x17   : > { %s2149_s29 = scalar_select %p1625_p6, 1, 0 }
  0x18   : > { %s2151_s1 = sld [smem:[#allocation25_spill]]  ;;  %s226_s11 = scalar_lea.vmem [#allocation7], %s1048_s6 }
  0x19   : > { %2150 = sst [smem:[#allocation20_spill]] %s2149_s29  ;;  %s234_s12 = sshll.u32 %s226_s11, 4  ;;  %s1640_s12 = int_to_ptr.vmem [resolvable:$true] %s234_s12 }
  0x1a   : > { %p1644_p7 = pnand %p2122_p4, %p88_p5  ;;  %s1650_s14 = scalar_lea.sflag [#allocation8], %s222_s30 }
  0x1c   : > { %p2138_p11 = pneg %p1644_p7 }
  0x1e   : > { %s1638_s10 = scalar_lea.hbm %s2151_s1, %s1076_s7  ;;  %s1302_s8 = scalar_lea.hbm %s2151_s1, 1024 }
  0x1f   : > { %s1297_s15 = scalar_lea.hbm %s1638_s10, 512  ;;  %p1303_p2 = scmp.lt.u32.totalorder %s1638_s10, %s2151_s1 }
  0x20   : > { %p1298_p10 = scmp.ne.s32.totalorder %s1638_s10, %s1297_s15  ;;  %p1304_p3 = scmp.lt.u32.totalorder %s1302_s8, %s1297_s15 }
  0x21   : > { %p1306_p4 = scmp.lt.u32.totalorder %s1297_s15, %s1638_s10 }
  0x22   : > { %p1300_p12 = pnand %p2138_p11, %p1298_p10  ;;  %p1305_p5 = por %p1304_p3, %p1303_p2 }
  0x24   : > { %p1301_p13 = pneg %p1300_p12  ;;  %p1307_p0 = por %p1306_p4, %p1305_p5 }
  0x26   : > { %p1308_p8 = pnand %p1307_p0, %p1301_p13 }
  0x28   : > { %1311 = shalt.err (!%p1308_p8)
}
  0x29   : > { %s1312_s30 = scalar_lea.vmem %s1640_s12, 512  ;;  %s1521_s6 = smov [#allocation7]  }
  0x2a   : > { %p1313_p10 = scmp.ne.s32.totalorder %s1640_s12, %s1312_s30  ;;  %s1317_s7 = sshll.u32 %s1521_s6, 4  ;;  %s1318_s7 = int_to_ptr.vmem [resolvable:$false] %s1317_s7 }
  0x2b   : > { %s1319_s9 = scalar_lea.vmem %s1318_s7, 1024  ;;  %p1320_p6 = scmp.lt.s32.totalorder %s1640_s12, %s1318_s7 }
  0x2c   : > { %p1315_p12 = pnand %p1313_p10, %p2138_p11  ;;  %p1321_p2 = scmp.lt.s32.totalorder %s1319_s9, %s1312_s30 }
  0x2e   : > { %p1316_p9 = pneg %p1315_p12  ;;  %p1322_p3 = por %p1321_p2, %p1320_p6 }
  0x30   : > { %p1323_p4 = pnand %p1322_p3, %p1316_p9 }
  0x32   : > { %1326 = shalt.err (!%p1323_p4)
}
  0x33   : > { %s2126_s15 = smov 128   ;;  %s2128_s8 = smov 8  }
  0x34   : > { %1159 = dma.hbm_to_vmem [thread:$0]  (!%p1644_p7), %s1638_s10, 512, %s1640_s12, %s1650_s14, %s2126_s15, %s2126_s15, %s2128_s8  }
  0x35   : > { %p2153_p0 = scmp.lt.s32.totalorder %s1519_s25, 5  ;;  %p2154_p6 = scmp.ge.s32.totalorder %s1519_s25, 1 }
  0x36   : > { %s35_s30 = sadd.s32 1, %s1511_s23  ;;  %s42_s6 = sadd.s32 1, %s1515_s24 }
  0x37   : > { %p1685_p8 = pnand %p2154_p6, %p2153_p0  ;;  %p36_p9 = scmp.ge.s32.totalorder %s35_s30, 2 }
  0x38   : > { %s51_s7 = sadd.s32 1, %s1499_s20  ;;  %p58_p13 = scmp.ne.s32.totalorder %s1499_s20, %s1495_s19 }
  0x39   : > { %s2155_s11 = scalar_select %p1685_p8, 1, 0 }
  0x3a   : > { %p64_p5 = scmp.ne.s32.totalorder %s1495_s19, %s1491_s18  ;;  %s2195_s30 = smov (%p36_p9, %s35_s30), 0 }
  0x3b   : > { %2156 = sst [smem:[#allocation21_spill]] %s2195_s30  ;;  %s2197_s6 = smov (!%p36_p9, %s42_s6), %s1515_s24 }
  0x3c   : > { %s47_s10 = ssub.s32 %s1511_s23, %s2195_s30  ;;  %p2157_p10 = scmp.eq.s32.totalorder %s1519_s25, 0 }
  0x3d   : > { %p44_p2 = scmp.ge.s32.totalorder %s2197_s6, 2  ;;  %p1709_p3 = por %p1612_p1, %p64_p5 }
  0x3e   : > { %p1703_p12 = por %p2157_p10, %p58_p13  ;;  %s1714_s18 = sand.u32 1, %s1499_s20  }
  0x3f   : > { %s2159_s9 = scalar_select %p1709_p3, 1, 0 }
  0x40   : > { %s1046_s26 = sshll.u32 %s1515_s24, 3  ;;  %s2199_s6 = smov (%p44_p2, %s2197_s6), 0 }
  0x41   : > { %2160 = sst [smem:[#allocation22_spill]] %s2159_s9  ;;  %s1045_s15 = sshll.u32 %s1714_s18, 5 }
  0x42   : > { %2161 = sst [smem:[#allocation23_spill]] %s2199_s6  ;;  %s46_s8 = ssub.s32 %s1515_s24, %s2199_s6 }
  0x43   : > { %s48_s28 = sor.u32 %s47_s10, %s46_s8  ;;  %p77_p4 = scmp.eq.s32.totalorder %s46_s8, 0 }
  0x44   : > { %p49_p1 = scmp.eq.s32.totalorder %s48_s28, 0  ;;  %s209_s27 = sadd.s32 %s1511_s23, %s1046_s26 }
  0x45   : > { %s2162_s1 = sadd.s32 1, %s1487_s17  ;;  %s1047_s4 = sshll.u32 %s209_s27, 7 }
  0x46   : > { %s1726_s30 = scalar_select %p77_p4, %s1487_s17, %s2162_s1  }
  0x47   : > { %s1729_s21 = scalar_select %p49_p1, %s1499_s20, %s51_s7  }
  0x48   : > { %s204_s22 = scalar_lea.vmem [#allocation5], %s1045_s15  ;;  %s2163_s0 = sld [smem:[#allocation24_spill]] }
  0x49   : > { %s212_s29 = sshll.u32 %s204_s22, 4  ;;  %p2164_p0 = scmp.lt.s32.totalorder %s1519_s25, 4  ;;  %s1736_s29 = int_to_ptr.vmem [resolvable:$true] %s212_s29 }
  0x4a   : > { %s1051_s22 = sshll.u32 %s1714_s18, 6  ;;  %s1052_s26 = sshll.u32 %s1515_s24, 4 }
  0x4b   : > { %p1742_p6 = pnand %p2164_p0, %p1703_p12  ;;  %s201_s28 = scalar_lea.sflag [#allocation6], %s1714_s18 }
  0x4d   : > { %p1329_p13 = pneg %p1742_p6 }
  0x4e   : > { %s1734_s19 = scalar_lea.hbm %s2163_s0, %s1047_s4  ;;  %s1332_s8 = scalar_lea.hbm %s2163_s0, 2048 }
  0x4f   : > { %s1327_s16 = scalar_lea.hbm %s1734_s19, 512  ;;  %p1333_p12 = scmp.lt.u32.totalorder %s1734_s19, %s2163_s0 }
  0x50   : > { %p1328_p9 = scmp.ne.s32.totalorder %s1734_s19, %s1327_s16  ;;  %p1334_p2 = scmp.lt.u32.totalorder %s1332_s8, %s1327_s16 }
  0x51   : > { %p1336_p1 = scmp.lt.u32.totalorder %s1327_s16, %s1734_s19 }
  0x52   : > { %p1330_p5 = pnand %p1329_p13, %p1328_p9  ;;  %p1335_p4 = por %p1334_p2, %p1333_p12 }
  0x54   : > { %p1331_p10 = pneg %p1330_p5  ;;  %p1337_p0 = por %p1336_p1, %p1335_p4 }
  0x56   : > { %p1338_p11 = pnand %p1337_p0, %p1331_p10 }
  0x58   : > { %1341 = shalt.err (!%p1338_p11)
}
  0x59   : > { %s1342_s12 = scalar_lea.vmem %s1736_s29, 512  ;;  %s1524_s9 = smov [#allocation5]  }
  0x5a   : > { %p1343_p9 = scmp.ne.s32.totalorder %s1736_s29, %s1342_s12  ;;  %s1347_s27 = sshll.u32 %s1524_s9, 4  ;;  %s1348_s27 = int_to_ptr.vmem [resolvable:$false] %s1347_s27 }
  0x5b   : > { %s1349_s4 = scalar_lea.vmem %s1348_s27, 1024  ;;  %p1350_p8 = scmp.lt.s32.totalorder %s1736_s29, %s1348_s27 }
  0x5c   : > { %p1345_p5 = pnand %p1343_p9, %p1329_p13  ;;  %p1351_p12 = scmp.lt.s32.totalorder %s1349_s4, %s1342_s12 }
  0x5e   : > { %p1346_p3 = pneg %p1345_p5  ;;  %p1352_p2 = por %p1351_p12, %p1350_p8 }
  0x60   : > { %p1353_p4 = pnand %p1352_p2, %p1346_p3 }
  0x62   : > { %1356 = shalt.err (!%p1353_p4)
}
  0x63   : > { %s1525_s16 = smov 256   ;;  %s2166_s15 = smov 8  }
  0x64   : > { %s2167_s8 = smov 128   ;;  %s253_s7 = sadd.s32 %s1511_s23, %s1052_s26 }
  0x65   : > { %1156 = dma.hbm_to_vmem [thread:$0]  (!%p1742_p6), %s1734_s19, 512, %s1736_s29, %s201_s28, %s1525_s16, %s2167_s8, %s2166_s15  }
  0x66   : > { %s248_s10 = scalar_lea.vmem [#allocation9], %s1051_s22  ;;  %s1053_s9 = sshll.u32 %s253_s7, 7 }
  0x67   : > { %s256_s12 = sshll.u32 %s248_s10, 4  ;;  %s1789_s0 = scalar_lea.hbm %s2119_s2, %s1053_s9  ;;  %s1784_s12 = int_to_ptr.vmem [resolvable:$true] %s256_s12 }
  0x68   : > { %s1357_s6 = scalar_lea.hbm %s1789_s0, 1024  ;;  %s1362_s18 = scalar_lea.hbm %s2119_s2, 4096 }
  0x69   : > { %p1358_p11 = scmp.ne.s32.totalorder %s1789_s0, %s1357_s6  ;;  %p1363_p10 = scmp.lt.u32.totalorder %s1789_s0, %s2119_s2 }
  0x6a   : > { %p1364_p1 = scmp.lt.u32.totalorder %s1362_s18, %s1357_s6  ;;  %p1366_p9 = scmp.lt.u32.totalorder %s1357_s6, %s1789_s0 }
  0x6b   : > { %p1360_p8 = pnand %p1358_p11, %p1329_p13 }
  0x6c   : > { %p1365_p0 = por %p1364_p1, %p1363_p10 }
  0x6d   : > { %p1361_p3 = pneg %p1360_p8 }
  0x6e   : > { %p1367_p5 = por %p1366_p9, %p1365_p0 }
  0x70   : > { %p1368_p12 = pnand %p1367_p5, %p1361_p3 }
  0x72   : > { %1371 = shalt.err (!%p1368_p12)
}
  0x73   : > { %s1372_s28 = scalar_lea.vmem %s1784_s12, 1024  ;;  %s1526_s7 = smov [#allocation9]  }
  0x74   : > { %p1373_p2 = scmp.ne.s32.totalorder %s1784_s12, %s1372_s28  ;;  %s1377_s10 = sshll.u32 %s1526_s7, 4  ;;  %s1378_s10 = int_to_ptr.vmem [resolvable:$false] %s1377_s10 }
  0x75   : > { %s1379_s9 = scalar_lea.vmem %s1378_s10, 2048  ;;  %p1380_p8 = scmp.lt.s32.totalorder %s1784_s12, %s1378_s10 }
  0x76   : > { %p1375_p4 = pnand %p1373_p2, %p1329_p13  ;;  %p1381_p10 = scmp.lt.s32.totalorder %s1379_s9, %s1372_s28 }
  0x78   : > { %p1376_p11 = pneg %p1375_p4  ;;  %p1382_p1 = por %p1381_p10, %p1380_p8 }
  0x7a   : > { %p1383_p0 = pnand %p1382_p1, %p1376_p11 }
  0x7c   : > { %1386 = shalt.err (!%p1383_p0)
}
  0x7d   : > { %1162 = dma.hbm_to_vmem [thread:$0]  (!%p1742_p6), %s1789_s0, 1024, %s1784_s12, %s1650_s14, %s1525_s16, %s2167_s8, %s2166_s15  }
  0x7e   : > { %s1054_s6 = sshll.u32 %s1631_s5, 6  ;;  %s1077_s27 = sshll.u32 %s1515_s24, 10 }
  0x7f   : > { %s1823_s29 = scalar_lea.hbm %s2120_s3, %s1077_s27  ;;  %s270_s1 = scalar_lea.vmem [#allocation10], %s1054_s6 }
  0x80   : > { %s278_s18 = sshll.u32 %s270_s1, 4  ;;  %s267_s22 = scalar_lea.sflag [#allocation11], %s1631_s5  ;;  %s1825_s18 = int_to_ptr.vmem [resolvable:$true] %s278_s18 }
  0x81   : > { %s1387_s26 = scalar_lea.hbm %s1823_s29, 1024  ;;  %p2168_p6 = pneg %p1644_p7 }
  0x82   : > { %p1388_p13 = scmp.ne.s32.totalorder %s1823_s29, %s1387_s26  ;;  %s1392_s16 = scalar_lea.hbm %s2120_s3, 2048 }
  0x83   : > { %p1393_p5 = scmp.lt.u32.totalorder %s1823_s29, %s2120_s3  ;;  %p1394_p12 = scmp.lt.u32.totalorder %s1392_s16, %s1387_s26 }
  0x84   : > { %p1390_p3 = pnand %p1388_p13, %p2168_p6  ;;  %p1396_p4 = scmp.lt.u32.totalorder %s1387_s26, %s1823_s29 }
  0x85   : > { %p1395_p2 = por %p1394_p12, %p1393_p5 }
  0x86   : > { %p1391_p9 = pneg %p1390_p3 }
  0x87   : > { %p1397_p11 = por %p1396_p4, %p1395_p2 }
  0x89   : > { %p1398_p8 = pnand %p1397_p11, %p1391_p9 }
  0x8b   : > { %1401 = shalt.err (!%p1398_p8)
}
  0x8c   : > { %s1402_s7 = scalar_lea.vmem %s1825_s18, 1024  ;;  %p2169_p1 = pmov %p2168_p6 }
  0x8d   : > { %p1403_p10 = scmp.ne.s32.totalorder %s1825_s18, %s1402_s7  ;;  %s1527_s10 = smov [#allocation10]  }
  0x8e   : > { %s1407_s9 = sshll.u32 %s1527_s10, 4  ;;  %s1408_s9 = int_to_ptr.vmem [resolvable:$false] %s1407_s9 }
  0x8f   : > { %p1405_p0 = pnand %p1403_p10, %p2169_p1  ;;  %s1409_s6 = scalar_lea.vmem %s1408_s9, 2048 }
  0x90   : > { %p1410_p6 = scmp.lt.s32.totalorder %s1825_s18, %s1408_s9  ;;  %p1411_p3 = scmp.lt.s32.totalorder %s1409_s6, %s1402_s7 }
  0x91   : > { %p1406_p13 = pneg %p1405_p0 }
  0x92   : > { %p1412_p5 = por %p1411_p3, %p1410_p6 }
  0x94   : > { %p1413_p12 = pnand %p1412_p5, %p1406_p13 }
  0x96   : > { %1416 = shalt.err (!%p1413_p12)
}
  0x97   : > { %1165 = dma.hbm_to_vmem [thread:$0]  (!%p1644_p7), %s1823_s29, 1024, %s1825_s18, %s267_s22, %s2167_s8, %s2167_s8, %s2166_s15  }
  0x98   : > { %p2170_p9 = scmp.ne.s32.totalorder %s2155_s11, 0 }
  0x99   : > { %s2171_s27 = sld [smem:[#allocation17_spill]] (!%p2170_p9)  ;;  %s2172_s4 = sld [smem:[#allocation22_spill]] (!%p2170_p9) }
  0x9a   : > { %290 = sbr.rel (%p2170_p9) target bundleno = 857 (0x359), region = 36 }
  0x9f   : > { %s292_s19 = sand.u32 (!%p2170_p9), 1, %s2171_s27   ;;  %p2173_p2 = scmp.ne.s32.totalorder (!%p2170_p9), %s2172_s4, 0 }
  0xa0   : > { %s1058_s1 = sshll.u32 (!%p2170_p9), %s292_s19, 5  ;;  %s293_s26 = scalar_lea.sflag (!%p2170_p9), [#allocation6], %s292_s19 }
  0xa1   : > { %s1859_s0 = scalar_lea.vmem [#allocation5], %s1058_s1 }
  0xa2   : > { %1462 = dma.done.wait (%p2173_p2), %s293_s26, 512  }
  0xa3   : > { %1464 = vsyncadd (%p2173_p2), %s293_s26, 4294966784  ;;  %s2174_s5 = sadd.s32 4294967295, %s1519_s25   ;;  %s2175_s13 = sld [smem:[#allocation16_spill]] }
  0xa4   : > { %s2176_s14 = sld [smem:[#allocation20_spill]]  ;;  %s301_s15 = sand.u32 1, %s2174_s5  }
  0xa5   : > { %s302_s29 = scalar_lea.sflag [#allocation8], %s301_s15 }
  0xa9   : > { %s303_s8 = sand.u32 1, %s2175_s13  }
  0xaa   : > { %s1059_s11 = sshll.u32 %s303_s8, 5  ;;  %p2177_p7 = scmp.ne.s32.totalorder %s2176_s14, 0 }
  0xab   : > { %s1868_s18 = scalar_lea.vmem [#allocation7], %s1059_s11 }
  0xac   : > { %1466 = dma.done.wait (%p2177_p7), %s302_s29, 512  }
  0xad   : > { %1468 = vsyncadd (%p2177_p7), %s302_s29, 4294966784  ;;  %s1060_s22 = sshll.u32 %s292_s19, 6 }
  0xae   : > { %s1874_s16 = scalar_lea.vmem [#allocation9], %s1060_s22 }
  0xaf   : > { %1470 = dma.done.wait (%p2173_p2), %s302_s29, 1024  }
  0xb0   : > { %1472 = vsyncadd (%p2173_p2), %s302_s29, 4294966272  ;;  %s1061_s12 = sshll.u32 %s303_s8, 6  ;;  %s320_s28 = scalar_lea.sflag [#allocation11], %s303_s8 }
  0xb1   : > { %s1880_s7 = scalar_lea.vmem [#allocation10], %s1061_s12 }
  0xb2   : > { %1474 = dma.done.wait (%p2177_p7), %s320_s28, 1024  }
  0xb3   : > { %1476 = vsyncadd (%p2177_p7), %s320_s28, 4294966272  ;;  %s2178_s10 = sld [smem:[#allocation19_spill]]  ;;  %s2179_s19 = sld [smem:[#allocation26_spill]] }
  0xb4   : > { %s2180_s1 = sld [smem:[#allocation18_spill]] }
  0xb9   : > { %p366_p4 = scmp.lt.s32.totalorder %s2178_s10, 1 }
  0xba   : > { %p1064_p11 = scmp.ne.s32.totalorder %s2180_s1, 0 }
  0xbb   : > { %s2201_s10 = smov (!%p366_p4, %s2178_s10), 1  ;;  %vm379_vm0 = vcmask (!%p1064_p11), 516096   ;;  %vm382_vm1 = vcmask (!%p1064_p11), 523264   ;;  %v1528_v0 = vmov (!%p1064_p11), -inf   ;;  %v1529_v1 = vmov (!%p1064_p11), 0.0  }
  0xbc   : > { %s1078_s9 = sshll.u32 %s2201_s10, 7  ;;  %378 = sbr.rel (%p1064_p11) target bundleno = 195 (0xc3), region = 56  ;;  %380 = vst.msk [vmem:[#allocation2] sm:$0x1] (!%p1064_p11), %vm379_vm0, %v1528_v0  ;;  %381 = vst.msk [vmem:[#allocation3] sm:$0x1] (!%p1064_p11), %vm379_vm0, %v1529_v1 }
  0xbd   : > { %s1891_s4 = scalar_lea.vmem %s2179_s19, %s1078_s9  ;;  %383 = vst.msk [vmem:[#allocation4] sm:$0xff] (!%p1064_p11), %vm382_vm1, %v1529_v1  ;;  %384 = vst.msk [vmem:[#allocation4 + $0x8] sm:$0xff] (!%p1064_p11), %vm382_vm1, %v1529_v1 }
  0xbe   : > { %385 = vst.msk [vmem:[#allocation4 + $0x10] sm:$0xff] (!%p1064_p11), %vm382_vm1, %v1529_v1  ;;  %386 = vst.msk [vmem:[#allocation4 + $0x18] sm:$0xff] (!%p1064_p11), %vm382_vm1, %v1529_v1 }
  0xbf   : > { %387 = vst.msk [vmem:[#allocation4 + $0x20] sm:$0xff] (!%p1064_p11), %vm382_vm1, %v1529_v1  ;;  %388 = vst.msk [vmem:[#allocation4 + $0x28] sm:$0xff] (!%p1064_p11), %vm382_vm1, %v1529_v1 }
  0xc0   : > { %389 = vst.msk [vmem:[#allocation4 + $0x30] sm:$0xff] (!%p1064_p11), %vm382_vm1, %v1529_v1  ;;  %390 = vst.msk [vmem:[#allocation4 + $0x38] sm:$0xff] (!%p1064_p11), %vm382_vm1, %v1529_v1 }
  0xc3 PF: > { %v391_v2 = vld [vmem:[%s1859_s0] sm:$0xff]  ;;  %v392_v3 = vld [vmem:[%s1859_s0 + $0x8] sm:$0xff]  ;;  %v393_v4 = vld [vmem:[%s1859_s0 + $0x10] sm:$0xff]  ;;  %vm419_vm2 = vcmask 261120   ;;  %vm558_vm3 = vcmask 523264   ;;  %vm694_vm4 = vcmask 516096  }
  0xc4   : > { %v395_v5 = vpack.c.bf16 %v392_v3, %v391_v2  ;;  %v394_v6 = vld [vmem:[%s1859_s0 + $0x18] sm:$0xff]  ;;  %v397_v7 = vld [vmem:[%s1868_s18] sm:$0xff]  ;;  %v398_v8 = vld [vmem:[%s1868_s18 + $0x8] sm:$0xff]  ;;  %s2181_s26 = sld [smem:[#allocation18_spill]] }
  0xc5   : > { %v401_v9 = vpack.c.bf16 %v398_v8, %v397_v7  ;;  %v399_v10 = vld [vmem:[%s1868_s18 + $0x10] sm:$0xff]  ;;  %v400_v11 = vld [vmem:[%s1868_s18 + $0x18] sm:$0xff]  ;;  %v396_v12 = vpack.c.bf16 %v394_v6, %v393_v4  ;;  %v718_v22 = vld [vmem:[%s1874_s16] sm:$0xff] }
  0xc6   : > { %403 = vxpose.xlu0.c.b16.start [1/2] (short) %v395_v5, 128  ;;  %v402_v13 = vpack.c.bf16 %v400_v11, %v399_v10  ;;  %v719_v23 = vld [vmem:[%s1874_s16 + $0x8] sm:$0xff] }
  0xc7   : > { %1101 = vmatprep.subr.bf16.mxu0 %v401_v9  ;;  %v726_v24 = vpack.c.bf16 %v719_v23, %v718_v22 }
  0xc8   : > { %1102 = vmatpush3.bf16.msra.mxu0 %v401_v9 }
  0xc9   : > { %1103 = vmatprep.subr.bf16.mxu0 %v402_v13  ;;  %1137 = vmatprep.mubr.bf16.mxu1 %v726_v24 }
  0xca   : > { %404 = vxpose.xlu0.c.b16.end [2/2] (short) %v396_v12, 128  ;;  %p1073_p8 = scmp.ne.s32.totalorder %s2181_s26, 1 }
  0xcc   : > { %1104 = vmatpush3.bf16.msra.mxu0 %v402_v13 }
 0x12c   : > { %v411_v14 = vpop.trf.xlu0 }
 0x12d   : > { %1105 = vmatprep.mubr.msk.bf16.mxu0 %vm419_vm2, %v411_v14 }
 0x130   : > { %v412_v15 = vpop.trf.xlu0 }
 0x131   : > { %1106 = vmatmul.mubr.msk.bf16.vlgmr.msra.gmra.mrb[0].mxu0 %vm419_vm2, %v412_v15 }
 0x134   : > { %v413_v16 = vpop.trf.xlu0 }
 0x135   : > { %1109 = vmatprep.mubr.msk.bf16.mxu0 %vm419_vm2, %v413_v16 }
 0x138   : > { %v414_v17 = vpop.trf.xlu0 }
 0x139   : > { %1110 = vmatmul.mubr.msk.bf16.gmra.mrb[4].mxu0 %vm419_vm2, %v414_v17 }
 0x13c   : > { %v415_v18 = vpop.trf.xlu0 }
 0x13d   : > { %1113 = vmatprep.mubr.msk.bf16.mxu0 %vm419_vm2, %v415_v18 }
 0x140   : > { %v416_v19 = vpop.trf.xlu0 }
 0x141   : > { %1114 = vmatmul.mubr.msk.bf16.gmra.mrb[8].mxu0 %vm419_vm2, %v416_v19 }
 0x144   : > { %v417_v20 = vpop.trf.xlu0 }
 0x145   : > { %1117 = vmatprep.mubr.msk.bf16.mxu0 %vm419_vm2, %v417_v20 }
 0x148   : > { %v418_v21 = vpop.trf.xlu0 }
 0x149   : > { %1118 = vmatmul.mubr.msk.bf16.gmra.mrb[12].mxu0 %vm419_vm2, %v418_v21 }
 0x204   : > { %v1107_v25 = vpop.f32.mrb[0].mxu0 }
 0x205   : > { %v478_v26 = vpop.f32.mrb[1].mxu0  ;;  %v1912_v29 = vmul.f32 0.17677669, %v1107_v25 }
 0x206   : > { %v1108_v27 = vpop.f32.mrb[2].mxu0  ;;  %v1914_v30 = vmul.f32 0.17677669, %v478_v26  ;;  %v601_v26 = vlaneseq }
 0x207   : > { %v481_v28 = vpop.f32.mrb[3].mxu0  ;;  %v1916_v32 = vmul.f32 0.17677669, %v1108_v27  ;;  %v561_v38 = vsel %vm558_vm3, %v1912_v29, -inf }
 0x208   : > { %v1920_v35 = vmul.f32 0.17677669, %v481_v28  ;;  %v559_v42 = vsel %vm558_vm3, %v1914_v30, -inf }
 0x209   : > { %v562_v46 = vsel %vm558_vm3, %v1916_v32, -inf }
 0x20a   : > { %v560_v49 = vsel %vm558_vm3, %v1920_v35, -inf }
 0x20c   : > { %v1111_v31 = vpop.f32.mrb[4].mxu0 }
 0x20d   : > { %v1918_v33 = vmul.f32 0.17677669, %v1111_v31  ;;  %v494_v34 = vpop.f32.mrb[5].mxu0  ;;  %v602_v31 = vshrl.u32 %v601_v26, 7 }
 0x20e   : > { %v1922_v36 = vmul.f32 0.17677669, %v494_v34  ;;  %v1112_v37 = vpop.f32.mrb[6].mxu0 }
 0x20f   : > { %v567_v39 = vsel %vm558_vm3, %v1918_v33, -inf  ;;  %v1928_v40 = vmul.f32 0.17677669, %v1112_v37  ;;  %v497_v41 = vpop.f32.mrb[7].mxu0  ;;  %v557_v37 = vld [vmem:[#allocation2] sm:$0x1] }
 0x210   : > { %v568_v43 = vmax.f32 %v561_v38, %v567_v39  ;;  %v563_v44 = vsel %vm558_vm3, %v1922_v36, -inf  ;;  %v1934_v45 = vmul.f32 0.17677669, %v497_v41  ;;  %v1973_v39 = vsub.s32 0, %v602_v31 }
 0x211   : > { %v564_v47 = vmax.f32 %v559_v42, %v563_v44  ;;  %v569_v48 = vsel %vm558_vm3, %v1928_v40, -inf }
 0x212   : > { %v570_v50 = vmax.f32 %v562_v46, %v569_v48  ;;  %v565_v51 = vsel %vm558_vm3, %v1934_v45, -inf }
 0x213   : > { %v566_v52 = vmax.f32 %v560_v49, %v565_v51 }
 0x214   : > { %v1115_v53 = vpop.f32.mrb[8].mxu0 }
 0x215   : > { %v1944_v54 = vmul.f32 0.17677669, %v1115_v53  ;;  %v510_v55 = vpop.f32.mrb[9].mxu0 }
 0x216   : > { %v1946_v56 = vmul.f32 0.17677669, %v510_v55  ;;  %v1116_v57 = vpop.f32.mrb[10].mxu0 }
 0x217   : > { %v575_v58 = vsel %vm558_vm3, %v1944_v54, -inf  ;;  %v1950_v59 = vmul.f32 0.17677669, %v1116_v57  ;;  %v513_v60 = vpop.f32.mrb[11].mxu0 }
 0x218   : > { %v576_v61 = vmax.f32 %v568_v43, %v575_v58  ;;  %v571_v62 = vsel %vm558_vm3, %v1946_v56, -inf  ;;  %v1954_v63 = vmul.f32 0.17677669, %v513_v60 }
 0x219   : > { %v572_v0 = vmax.f32 %v564_v47, %v571_v62  ;;  %v577_v1 = vsel %vm558_vm3, %v1950_v59, -inf }
 0x21a   : > { %v578_v2 = vmax.f32 %v570_v50, %v577_v1  ;;  %v573_v3 = vsel %vm558_vm3, %v1954_v63, -inf }
 0x21b   : > { %v574_v4 = vmax.f32 %v566_v52, %v573_v3 }
 0x21c   : > { %v1119_v5 = vpop.f32.mrb[12].mxu0 }
 0x21d   : > { %v1960_v6 = vmul.f32 0.17677669, %v1119_v5  ;;  %v526_v7 = vpop.f32.mrb[13].mxu0 }
 0x21e   : > { %v1962_v8 = vmul.f32 0.17677669, %v526_v7  ;;  %v1120_v9 = vpop.f32.mrb[14].mxu0 }
 0x21f   : > { %v583_v10 = vsel %vm558_vm3, %v1960_v6, -inf  ;;  %v1966_v11 = vmul.f32 0.17677669, %v1120_v9  ;;  %v529_v12 = vpop.f32.mrb[15].mxu0 }
 0x220   : > { %v584_v13 = vmax.f32 %v576_v61, %v583_v10  ;;  %v579_v14 = vsel %vm558_vm3, %v1962_v8, -inf  ;;  %v554_v15 = vmul.f32 0.17677669, %v529_v12 }
 0x221   : > { %v580_v16 = vmax.f32 %v572_v0, %v579_v14  ;;  %v585_v17 = vsel %vm558_vm3, %v1966_v11, -inf }
 0x222   : > { %v586_v18 = vmax.f32 %v578_v2, %v585_v17  ;;  %v581_v19 = vsel %vm558_vm3, %v554_v15, -inf }
 0x223   : > { %v582_v20 = vmax.f32 %v574_v4, %v581_v19 }
 0x224   : > { %v588_v21 = vmax.f32 %v584_v13, %v586_v18 }
 0x225   : > { %v587_v22 = vmax.f32 %v580_v16, %v582_v20 }
 0x227   : > { %v589_v23 = vmax.f32 %v587_v22, %v588_v21 }
 0x229   : > { %v590_v24 = vrot.slane %v589_v23, 4 }
 0x22b   : > { %v591_v25 = vmax.f32 %v589_v23, %v590_v24 }
 0x22d   : > { %v592_v27 = vrot.slane %v591_v25, 2 }
 0x22f   : > { %v593_v28 = vmax.f32 %v591_v25, %v592_v27 }
 0x231   : > { %v594_v34 = vrot.slane %v593_v28, 1 }
 0x233   : > { %v595_v38 = vmax.f32 %v593_v28, %v594_v34 }
 0x235   : > { %v596_v41 = vmax.f32 %v557_v37, %v595_v38 }
 0x237   : > { %v597_v42 = vsub.f32 %v557_v37, %v596_v41  ;;  %v604_v43 = vrot.slane %v596_v41, %v1973_v39  ;;  %819 = vst.msk [vmem:[#allocation2] sm:$0x1] %vm694_vm4, %v596_v41 }
 0x239   : > { %v598_v44 = vmul.f32 1.442695, %v597_v42  ;;  %v619_v46 = vsub.f32 %v554_v15, %v604_v43  ;;  %v606_v47 = vsub.f32 %v1914_v30, %v604_v43  ;;  %v607_v48 = vsub.f32 %v1920_v35, %v604_v43 }
 0x23a   : > { %v608_v49 = vsub.f32 %v1912_v29, %v604_v43  ;;  %v609_v50 = vsub.f32 %v1916_v32, %v604_v43  ;;  %v610_v51 = vsub.f32 %v1922_v36, %v604_v43  ;;  %v611_v52 = vsub.f32 %v1934_v45, %v604_v43 }
 0x23b   : > { %1261 = vpow2.f32 %v598_v44  ;;  %v648_v53 = vmul.f32 1.442695, %v619_v46  ;;  %v612_v55 = vsub.f32 %v1918_v33, %v604_v43  ;;  %v613_v57 = vsub.f32 %v1928_v40, %v604_v43 }
 0x23c   : > { %v614_v58 = vsub.f32 %v1946_v56, %v604_v43  ;;  %v615_v30 = vsub.f32 %v1954_v63, %v604_v43  ;;  %v616_v35 = vsub.f32 %v1944_v54, %v604_v43  ;;  %v617_v29 = vsub.f32 %v1950_v59, %v604_v43 }
 0x23d   : > { %v618_v32 = vsub.f32 %v1962_v8, %v604_v43  ;;  %v622_v60 = vmul.f32 1.442695, %v606_v47  ;;  %v624_v36 = vmul.f32 1.442695, %v607_v48  ;;  %1263 = vpow2.f32 %v648_v53 }
 0x23e   : > { %v626_v45 = vmul.f32 1.442695, %v608_v49  ;;  %v628_v61 = vmul.f32 1.442695, %v609_v50  ;;  %v620_v62 = vsub.f32 %v1960_v6, %v604_v43  ;;  %v630_v33 = vmul.f32 1.442695, %v610_v51 }
 0x23f   : > { %1265 = vpow2.f32 %v622_v60  ;;  %v632_v40 = vmul.f32 1.442695, %v611_v52  ;;  %v634_v56 = vmul.f32 1.442695, %v612_v55  ;;  %v621_v63 = vsub.f32 %v1966_v11, %v604_v43 }
 0x240   : > { %1267 = vpow2.f32 %v624_v36  ;;  %v636_v54 = vmul.f32 1.442695, %v613_v57  ;;  %v638_v59 = vmul.f32 1.442695, %v614_v58  ;;  %v640_v0 = vmul.f32 1.442695, %v615_v30 }
 0x241   : > { %1269 = vpow2.f32 %v626_v45  ;;  %v642_v2 = vmul.f32 1.442695, %v616_v35  ;;  %v644_v4 = vmul.f32 1.442695, %v617_v29  ;;  %v646_v5 = vmul.f32 1.442695, %v618_v32 }
 0x242   : > { %1271 = vpow2.f32 %v628_v61  ;;  %v650_v7 = vmul.f32 1.442695, %v620_v62  ;;  %v652_v9 = vmul.f32 1.442695, %v621_v63 }
 0x243   : > { %1273 = vpow2.f32 %v630_v33 }
 0x244   : > { %1275 = vpow2.f32 %v632_v40 }
 0x245   : > { %v1992_v1 = vpop.eup %1261  ;;  %1277 = vpow2.f32 %v634_v56 }
 0x246   : > { %v1996_v3 = vrot.slane %v1992_v1, %v1973_v39  ;;  %1279 = vpow2.f32 %v636_v54  ;;  %v720_v54 = vld [vmem:[%s1874_s16 + $0x10] sm:$0xff] }
 0x247   : > { %1281 = vpow2.f32 %v638_v59  ;;  %v1998_v6 = vpop.eup %1263  ;;  %v721_v59 = vld [vmem:[%s1874_s16 + $0x18] sm:$0xff] }
 0x248   : > { %1283 = vpow2.f32 %v640_v0  ;;  %v681_v33 = vsel %vm558_vm3, %v1998_v6, 0.0 }
 0x249   : > { %v1266_v8 = vpop.eup %1265  ;;  %1285 = vpow2.f32 %v642_v2  ;;  %v722_v2 = vld [vmem:[%s1874_s16 + $0x20] sm:$0xff] }
 0x24a   : > { %v1268_v10 = vpop.eup %1267  ;;  %1287 = vpow2.f32 %v644_v4  ;;  %v656_v11 = vsel %vm558_vm3, %v1266_v8, 0.0  ;;  %v723_v4 = vld [vmem:[%s1874_s16 + $0x28] sm:$0xff] }
 0x24b   : > { %v1270_v12 = vpop.eup %1269  ;;  %1289 = vpow2.f32 %v646_v5  ;;  %v657_v13 = vsel %vm558_vm3, %v1268_v10, 0.0  ;;  %v730_v14 = vpack.c.bf16 %v1268_v10, %v1266_v8 }
 0x24c   : > { %v1272_v15 = vpop.eup %1271  ;;  %v658_v16 = vadd.f32 %v657_v13, %v656_v11  ;;  %1291 = vpow2.f32 %v650_v7  ;;  %v659_v18 = vsel %vm558_vm3, %v1270_v12, 0.0  ;;  %v727_v7 = vpack.c.bf16 %v721_v59, %v720_v54  ;;  %v724_v11 = vld [vmem:[%s1874_s16 + $0x30] sm:$0xff] }
 0x24d   : > { %v1274_v17 = vpop.eup %1273  ;;  %1121 = vmatprep.subr.bf16.mxu1 %v730_v14  ;;  %v731_v19 = vpack.c.bf16 %v1272_v15, %v1270_v12  ;;  %1293 = vpow2.f32 %v652_v9  ;;  %v661_v23 = vsel %vm558_vm3, %v1272_v15, 0.0  ;;  %v725_v12 = vld [vmem:[%s1874_s16 + $0x38] sm:$0xff] }
 0x24e   : > { %v1276_v20 = vpop.eup %1275  ;;  %v660_v21 = vadd.f32 %v659_v18, %v658_v16  ;;  %1122 = vmatpush3.bf16.msra.mxu1 %v730_v14  ;;  %v663_v28 = vsel %vm558_vm3, %v1274_v17, 0.0  ;;  %v654_v14 = vld [vmem:[#allocation3] sm:$0x1]  ;;  %v729_v15 = vpack.c.bf16 %v725_v12, %v724_v11 }
 0x24f   : > { %v1278_v22 = vpop.eup %1277  ;;  %1123 = vmatprep.subr.bf16.mxu1 %v731_v19  ;;  %v732_v24 = vpack.c.bf16 %v1276_v20, %v1274_v17  ;;  %v665_v41 = vsel %vm558_vm3, %v1276_v20, 0.0  ;;  %v655_v17 = vmul.f32 %v1992_v1, %v654_v14  ;;  %v698_v20 = vld [vmem:[#allocation4 + $0x10] sm:$0xff] }
 0x250   : > { %v1280_v25 = vpop.eup %1279  ;;  %v662_v26 = vadd.f32 %v661_v23, %v660_v21  ;;  %v667_v47 = vsel %vm558_vm3, %v1278_v22, 0.0  ;;  %v696_v21 = vld [vmem:[#allocation4] sm:$0xff]  ;;  %v712_v23 = vmul.f32 %v1996_v3, %v698_v20 }
 0x251   : > { %v1282_v27 = vpop.eup %1281  ;;  %v733_v31 = vpack.c.bf16 %v1280_v25, %v1278_v22  ;;  %v669_v53 = vsel %vm558_vm3, %v1280_v25, 0.0  ;;  %v699_v22 = vld [vmem:[#allocation4 + $0x18] sm:$0xff] }
 0x252   : > { %v1284_v34 = vpop.eup %1283  ;;  %v664_v37 = vadd.f32 %v663_v28, %v662_v26  ;;  %1124 = vmatpush3.bf16.msra.mxu1 %v731_v19  ;;  %v671_v58 = vsel %vm558_vm3, %v1282_v27, 0.0  ;;  %v710_v26 = vmul.f32 %v1996_v3, %v696_v21 }
 0x253   : > { %v1286_v38 = vpop.eup %1285  ;;  %1125 = vmatprep.subr.bf16.mxu1 %v732_v24  ;;  %v734_v42 = vpack.c.bf16 %v1284_v34, %v1282_v27  ;;  %v673_v35 = vsel %vm558_vm3, %v1284_v34, 0.0 }
 0x254   : > { %v1288_v43 = vpop.eup %1287  ;;  %v666_v44 = vadd.f32 %v665_v41, %v664_v37  ;;  %v675_v32 = vsel %vm558_vm3, %v1286_v38, 0.0 }
 0x255   : > { %v1290_v46 = vpop.eup %1289  ;;  %v735_v48 = vpack.c.bf16 %v1288_v43, %v1286_v38  ;;  %v677_v36 = vsel %vm558_vm3, %v1288_v43, 0.0  ;;  %v702_v43 = vld [vmem:[#allocation4 + $0x30] sm:$0xff] }
 0x256   : > { %v1292_v49 = vpop.eup %1291  ;;  %v668_v50 = vadd.f32 %v667_v47, %v666_v44  ;;  %1126 = vmatpush3.bf16.msra.mxu1 %v732_v24  ;;  %v736_v51 = vpack.c.bf16 %v1998_v6, %v1290_v46  ;;  %v679_v61 = vsel %vm558_vm3, %v1290_v46, 0.0  ;;  %v728_v6 = vpack.c.bf16 %v723_v4, %v722_v2  ;;  %v697_v24 = vld [vmem:[#allocation4 + $0x8] sm:$0xff]  ;;  %v700_v44 = vld [vmem:[#allocation4 + $0x20] sm:$0xff]  ;;  %v703_v46 = vld [vmem:[#allocation4 + $0x38] sm:$0xff] }
 0x257   : > { %v1294_v52 = vpop.eup %1293  ;;  %1127 = vmatprep.subr.bf16.mxu1 %v733_v31  ;;  %v683_v56 = vsel %vm558_vm3, %v1292_v49, 0.0  ;;  %v711_v37 = vmul.f32 %v1996_v3, %v697_v24  ;;  %v716_v47 = vmul.f32 %v1996_v3, %v702_v43 }
 0x258   : > { %v670_v55 = vadd.f32 %v669_v53, %v668_v50  ;;  %v737_v57 = vpack.c.bf16 %v1294_v52, %v1292_v49  ;;  %v685_v0 = vsel %vm558_vm3, %v1294_v52, 0.0  ;;  %v714_v50 = vmul.f32 %v1996_v3, %v700_v44 }
 0x259   : > { %v717_v53 = vmul.f32 %v1996_v3, %v703_v46 }
 0x25a   : > { %v672_v30 = vadd.f32 %v671_v58, %v670_v55  ;;  %1128 = vmatpush3.bf16.msra.mxu1 %v733_v31  ;;  %v713_v31 = vmul.f32 %v1996_v3, %v699_v22 }
 0x25b   : > { %1129 = vmatprep.subr.bf16.mxu1 %v734_v42 }
 0x25c   : > { %v674_v29 = vadd.f32 %v673_v35, %v672_v30 }
 0x25e   : > { %v676_v60 = vadd.f32 %v675_v32, %v674_v29  ;;  %1130 = vmatpush3.bf16.msra.mxu1 %v734_v42 }
 0x25f   : > { %1131 = vmatprep.subr.bf16.mxu1 %v735_v48 }
 0x260   : > { %v678_v45 = vadd.f32 %v677_v36, %v676_v60  ;;  %v857_v60 = vld [vmem:[%s1880_s7 + $0x8] sm:$0xff] (!%p1073_p8)  ;;  %v858_v36 = vld [vmem:[%s1880_s7 + $0x10] sm:$0xff] (!%p1073_p8) }
 0x261   : > { %865 = vst.msk [vmem:[%s1891_s4 + $0x48] sm:$0xff] (!%p1073_p8), %vm558_vm3, %v857_v60  ;;  %866 = vst.msk [vmem:[%s1891_s4 + $0x50] sm:$0xff] (!%p1073_p8), %vm558_vm3, %v858_v36 }
 0x262   : > { %v680_v62 = vadd.f32 %v679_v61, %v678_v45  ;;  %1132 = vmatpush3.bf16.msra.mxu1 %v735_v48  ;;  %v701_v48 = vld [vmem:[#allocation4 + $0x28] sm:$0xff]  ;;  %v859_v45 = vld [vmem:[%s1880_s7 + $0x18] sm:$0xff] (!%p1073_p8)  ;;  %v860_v61 = vld [vmem:[%s1880_s7 + $0x20] sm:$0xff] (!%p1073_p8) }
 0x263   : > { %1133 = vmatprep.subr.bf16.mxu1 %v736_v51  ;;  %v715_v58 = vmul.f32 %v1996_v3, %v701_v48  ;;  %v856_v3 = vld [vmem:[%s1880_s7] sm:$0xff] (!%p1073_p8)  ;;  %867 = vst.msk [vmem:[%s1891_s4 + $0x58] sm:$0xff] (!%p1073_p8), %vm558_vm3, %v859_v45  ;;  %868 = vst.msk [vmem:[%s1891_s4 + $0x60] sm:$0xff] (!%p1073_p8), %vm558_vm3, %v860_v61 }
 0x264   : > { %v682_v40 = vadd.f32 %v681_v33, %v680_v62  ;;  %864 = vst.msk [vmem:[%s1891_s4 + $0x40] sm:$0xff] (!%p1073_p8), %vm558_vm3, %v856_v3  ;;  %v861_v62 = vld [vmem:[%s1880_s7 + $0x28] sm:$0xff] (!%p1073_p8)  ;;  %v862_v33 = vld [vmem:[%s1880_s7 + $0x30] sm:$0xff] (!%p1073_p8) }
 0x265   : > { %869 = vst.msk [vmem:[%s1891_s4 + $0x68] sm:$0xff] (!%p1073_p8), %vm558_vm3, %v861_v62  ;;  %870 = vst.msk [vmem:[%s1891_s4 + $0x70] sm:$0xff] (!%p1073_p8), %vm558_vm3, %v862_v33 }
 0x266   : > { %1134 = vmatpush3.bf16.msra.mxu1 %v736_v51  ;;  %v684_v63 = vadd.f32 %v683_v56, %v682_v40  ;;  %v863_v40 = vld [vmem:[%s1880_s7 + $0x38] sm:$0xff] (!%p1073_p8) }
 0x267   : > { %1135 = vmatprep.subr.bf16.mxu1 %v737_v57  ;;  %871 = vst.msk [vmem:[%s1891_s4 + $0x78] sm:$0xff] (!%p1073_p8), %vm558_vm3, %v863_v40 }
 0x268   : > { %v686_v5 = vadd.f32 %v685_v0, %v684_v63 }
 0x26a   : > { %v687_v8 = vrot.slane %v686_v5, 4  ;;  %1136 = vmatpush3.bf16.msra.mxu1 %v737_v57 }
 0x26c   : > { %v688_v9 = vadd.f32 %v687_v8, %v686_v5 }
 0x26d   : > { %1138 = vmatmul.mubr.bf16.vlgmr.msra.gmra.mrb[0].mxu1 %v727_v7 }
 0x26e   : > { %v689_v10 = vrot.slane %v688_v9, 2  ;;  %1141 = vmatprep.mubr.bf16.mxu1 %v728_v6 }
 0x270   : > { %v690_v13 = vadd.f32 %v689_v10, %v688_v9 }
 0x272   : > { %v691_v16 = vrot.slane %v690_v13, 1 }
 0x274   : > { %v692_v18 = vadd.f32 %v691_v16, %v690_v13 }
 0x275   : > { %1142 = vmatmul.mubr.bf16.gmra.mrb[4].mxu1 %v729_v15 }
 0x276   : > { %v693_v19 = vadd.f32 %v692_v18, %v655_v17 }
 0x278   : > { %695 = vst.msk [vmem:[#allocation3] sm:$0x1] %vm694_vm4, %v693_v19 }
 0x27f   : > { %v824_v32 = vld [vmem:[#allocation3] sm:$0x1] (!%p1073_p8) }
 0x280   : > { %1295 = vrcp.f32 (!%p1073_p8), %v824_v32 }
 0x28a   : > { %v1296_v54 = vpop.eup (!%p1073_p8), %1295 }
 0x28b   : > { %v838_v4 = vrot.slane (!%p1073_p8), %v1296_v54, %v1973_v39 }
 0x340   : > { %v1139_v25 = vpop.f32.mrb[0].mxu1 }
 0x341   : > { %v805_v27 = vadd.f32 %v1139_v25, %v712_v23  ;;  %v772_v28 = vpop.f32.mrb[1].mxu1 }
 0x342   : > { %v803_v34 = vadd.f32 %v772_v28, %v710_v26  ;;  %v1140_v1 = vpop.f32.mrb[2].mxu1 }
 0x343   : > { %813 = vst.msk [vmem:[#allocation4 + $0x10] sm:$0xff] %vm558_vm3, %v805_v27  ;;  %v806_v38 = vadd.f32 %v1140_v1, %v713_v31  ;;  %v775_v41 = vpop.f32.mrb[3].mxu1 }
 0x344   : > { %811 = vst.msk [vmem:[#allocation4] sm:$0xff] %vm558_vm3, %v803_v34  ;;  %v804_v42 = vadd.f32 %v775_v41, %v711_v37 }
 0x345   : > { %814 = vst.msk [vmem:[#allocation4 + $0x18] sm:$0xff] %vm558_vm3, %v806_v38 }
 0x346   : > { %812 = vst.msk [vmem:[#allocation4 + $0x8] sm:$0xff] %vm558_vm3, %v804_v42 }
 0x348   : > { %v1143_v49 = vpop.f32.mrb[4].mxu1  ;;  %823 = sbr.rel (%p1073_p8) target bundleno = 857 (0x359), region = 60 }
 0x349   : > { %v809_v51 = vadd.f32 %v1143_v49, %v716_v47  ;;  %v788_v52 = vpop.f32.mrb[5].mxu1 }
 0x34a   : > { %v807_v55 = vadd.f32 %v788_v52, %v714_v50  ;;  %v1144_v57 = vpop.f32.mrb[6].mxu1  ;;  %v828_v59 = vld [vmem:[#allocation4 + $0x10] sm:$0xff] (!%p1073_p8) }
 0x34b   : > { %817 = vst.msk [vmem:[#allocation4 + $0x30] sm:$0xff] %vm558_vm3, %v809_v51  ;;  %v810_v30 = vadd.f32 %v1144_v57, %v717_v53  ;;  %v791_v35 = vpop.f32.mrb[7].mxu1  ;;  %v826_v56 = vld [vmem:[#allocation4] sm:$0xff] (!%p1073_p8)  ;;  %v842_v10 = vmul.f32 (!%p1073_p8), %v838_v4, %v828_v59 }
 0x34c   : > { %815 = vst.msk [vmem:[#allocation4 + $0x20] sm:$0xff] %vm558_vm3, %v807_v55  ;;  %v808_v29 = vadd.f32 %v791_v35, %v715_v58  ;;  %v829_v0 = vld [vmem:[#allocation4 + $0x18] sm:$0xff] (!%p1073_p8)  ;;  %v840_v6 = vmul.f32 (!%p1073_p8), %v838_v4, %v826_v56 }
 0x34d   : > { %818 = vst.msk [vmem:[#allocation4 + $0x38] sm:$0xff] %vm558_vm3, %v810_v30  ;;  %v827_v63 = vld [vmem:[#allocation4 + $0x8] sm:$0xff] (!%p1073_p8)  ;;  %v843_v11 = vmul.f32 (!%p1073_p8), %v838_v4, %v829_v0  ;;  %850 = vst.msk [vmem:[%s1891_s4 + $0x10] sm:$0xff] (!%p1073_p8), %vm558_vm3, %v842_v10 }
 0x34e   : > { %816 = vst.msk [vmem:[#allocation4 + $0x28] sm:$0xff] %vm558_vm3, %v808_v29  ;;  %v841_v9 = vmul.f32 (!%p1073_p8), %v838_v4, %v827_v63  ;;  %848 = vst.msk [vmem:[%s1891_s4] sm:$0xff] (!%p1073_p8), %vm558_vm3, %v840_v6 }
 0x34f   : > { %851 = vst.msk [vmem:[%s1891_s4 + $0x18] sm:$0xff] %vm558_vm3, %v843_v11 }
 0x350   : > { %849 = vst.msk [vmem:[%s1891_s4 + $0x8] sm:$0xff] %vm558_vm3, %v841_v9 }
 0x352   : > { %v832_v7 = vld [vmem:[#allocation4 + $0x30] sm:$0xff] }
 0x353   : > { %v830_v2 = vld [vmem:[#allocation4 + $0x20] sm:$0xff]  ;;  %v846_v14 = vmul.f32 %v838_v4, %v832_v7 }
 0x354   : > { %v833_v8 = vld [vmem:[#allocation4 + $0x38] sm:$0xff]  ;;  %v844_v12 = vmul.f32 %v838_v4, %v830_v2 }
 0x355   : > { %v831_v5 = vld [vmem:[#allocation4 + $0x28] sm:$0xff]  ;;  %v847_v15 = vmul.f32 %v838_v4, %v833_v8  ;;  %854 = vst.msk [vmem:[%s1891_s4 + $0x30] sm:$0xff] %vm558_vm3, %v846_v14 }
 0x356   : > { %v845_v13 = vmul.f32 %v838_v4, %v831_v5  ;;  %852 = vst.msk [vmem:[%s1891_s4 + $0x20] sm:$0xff] %vm558_vm3, %v844_v12 }
 0x357   : > { %855 = vst.msk [vmem:[%s1891_s4 + $0x38] sm:$0xff] %vm558_vm3, %v847_v15 }
 0x358   : > { %853 = vst.msk [vmem:[%s1891_s4 + $0x28] sm:$0xff] %vm558_vm3, %v845_v13 }
 0x359 PF: > { %s23_s25 = sadd.s32 1, %s1519_s25   ;;  %s2182_s15 = sld [smem:[#allocation16_spill]] }
 0x35a   : > { %p20_p10 = scmp.ge.s32.totalorder %s23_s25, 6   ;;  %s2183_s18 = sld [smem:[#allocation17_spill]] }
 0x35b   : > { %s2184_s0 = sld [smem:[#allocation21_spill]]  ;;  %s2185_s5 = sld [smem:[#allocation23_spill]] }
 0x35c   : > { %s2186_s16 = smov %s1487_s17  ;;  %s2187_s17 = smov %s1726_s30 }
 0x35d   : > { %s2188_s19 = smov %s1499_s20  ;;  %s2189_s20 = smov %s1729_s21 }
 0x35e   : > { %s2190_s21 = smov %s1511_s23  ;;  %s2191_s22 = smov %s1515_s24 }
 0x35f   :  { %22 = sbr.rel (!%p20_p10) target bundleno = 15 (0xf), region = 121 }
 0x361   : > { %s2192_s23 = smov %s2184_s0  ;;  %s2193_s24 = smov %s2185_s5 }
 0x366   :  { %899 = vsyncpa [#allocation6], 1 }
 0x367   :  { %901 = vsyncpa [#allocation6 + $0x1], 1 }
 0x368   :  { %902 = vsyncpa [#allocation8], 1 }
 0x369   :  { %904 = vsyncpa [#allocation8 + $0x1], 1 }
 0x36a   :  { %905 = vsyncpa [#allocation11], 1 }
 0x36b   :  { %907 = vsyncpa [#allocation11 + $0x1], 1 }

</bundles_post_ra>
